<compile_context>
chip_gen: v7x
topology: tpu7x:2x2x1
jax: 0.10.0
libtpu: 0.0.40
codegen_flags: <defaults>
</compile_context>

<pallas_src>
import functools

import jax
import jax.numpy as jnp
from jax.experimental import pallas as pl
from jax.experimental.pallas import tpu as pltpu


def _round_up(x, m):
    return -(-x // m) * m


def _group_aggregate_kernel(x_ref, wf_ref, c2_ref, out_ref, *, user_dim):
    """One grid step: a block of GB groups.

    x_ref  : (GB, T, U+A)  concatenated [member | act] embeddings (f32 or bf16)
    wf_ref : (U+A, H)      stacked [Wu; Wa] (same dtype as x), VMEM-resident
    c2_ref : (2, H)        row 0 = fused bias (bu+ba), row 1 = W2 row   (f32)
    out_ref: (GB, U)       aggregated group embeddings                  (f32)
    """
    gb, t, c = x_ref.shape
    x = x_ref[...]                                        # (GB, T, U+A)

    # Fused userLayer + actLayer: one (GB*T, U+A) @ (U+A, H) MXU pass.
    # With T == 8 (a sublane tile) this leading-axis merge is a free reshape.
    x2 = x.reshape(gb * t, c)
    bf = c2_ref[0:1, :]                                   # (1, H) fused bias
    w2 = c2_ref[1:2, :]                                   # (1, H) Layer2 weights
    proj = jnp.dot(x2, wf_ref[...],
                   preferred_element_type=jnp.float32) + bf   # (GB*T, H) f32
    h = jnp.maximum(proj, 0.0)

    # Layer2 (H -> 1) on the VPU (lane reduce).  b2 is intentionally omitted:
    # softmax shift-invariance makes it a no-op on the final output.
    att = jnp.sum(h * w2, axis=-1, keepdims=True)         # (GB*T, 1)
    att = att.reshape(gb, t, 1)                           # (GB, T, 1)

    # Numerically-stable softmax over the T members.  Normalization is deferred
    # to the (GB, U) aggregate (denser layout) via an EUP approximate reciprocal.
    att_max = jnp.max(att, axis=1, keepdims=True)         # (GB, 1, 1)
    e = jnp.exp(att - att_max)                            # (GB, T, 1)
    denom = jnp.sum(e, axis=1)                            # (GB, 1)

    # Weighted aggregation of the raw member embeddings; the f32 cast fuses into
    # the multiply (no standalone f32 copy of the member slab).
    member = x[:, :, :user_dim]                           # (GB, T, U) input dtype
    acc = jnp.sum(e * member.astype(jnp.float32), axis=1)  # (GB, U) unnormalized
    out_ref[...] = acc * pl.reciprocal(denom, approx=True)


def _choose_group_block(g, t, c, u, group_block, input_dtype):
    """Sublane-aligned group block, VMEM-budgeted, >=2 grid steps when sensible.

    Large blocks amortize the ~0.35 us per-grid-step pipeline cost.  The cap
    keeps (double-buffered x block + double-buffered out block) well under the
    smallest scoped-VMEM default (16 MiB on v5e; v7x has 32 MiB scoped / 64 MiB
    physical).  For v7x megacore we prefer >= 2 steps on the 'parallel' axis.
    """
    gb = _round_up(max(8, min(group_block, g)), 8)

    per_group_bytes = 2 * (t * c * jnp.dtype(input_dtype).itemsize + u * 4)
    budget = 12 * 1024 * 1024
    while gb > 8 and gb * per_group_bytes > budget:
        gb = _round_up(gb // 2, 8)

    # Keep both v7x TensorCores fed when there is enough work (no-op otherwise).
    if g >= 64 and -(-g // gb) < 2:
        gb = _round_up(-(-g // 2), 8)
    return gb


def group_aggregate_batched(member_embeds, act_embeds, params, *,
                            group_block=512, input_dtype=jnp.float32):
    """member_embeds: (G, T, U), act_embeds: (G, T, A) -> (G, U) float32.

    `input_dtype=jnp.bfloat16` halves the streamed bytes and is safe on all
    generations (v5e/v6e/v7x): the MXU consumes bf16 natively and the softmax /
    aggregation epilogue stays f32 (member values are bf16-rounded, ~1e-2 rel).
    """
    g, t, u = member_embeds.shape
    a = act_embeds.shape[-1]
    c = u + a
    hidden = params["Wu"].shape[1]

    # Fuse the two input projections: [member | act] @ [Wu; Wa] + (bu + ba).
    x = jnp.concatenate([member_embeds, act_embeds], axis=-1).astype(input_dtype)
    wf = jnp.concatenate([params["Wu"], params["Wa"]], axis=0).astype(input_dtype)
    # One resident (2, H) constant: row 0 = fused bias, row 1 = W2 row.
    # b2 is NOT passed: it shifts every logit equally and cancels in softmax.
    c2 = jnp.concatenate(
        [(params["bu"] + params["ba"]).reshape(1, hidden),
         params["W2"].reshape(1, hidden)], axis=0).astype(jnp.float32)

    gb = _choose_group_block(g, t, c, u, group_block, input_dtype)
    g_pad = _round_up(g, gb)
    if g_pad != g:
        # Zero padding is required: zero members -> finite uniform softmax ->
        # exactly-zero aggregate rows (no NaN), sliced off below.
        x = jnp.pad(x, ((0, g_pad - g), (0, 0), (0, 0)))

    kernel = functools.partial(_group_aggregate_kernel, user_dim=u)

    out = pl.pallas_call(
        kernel,
        out_shape=jax.ShapeDtypeStruct((g_pad, u), jnp.float32),
        grid=(g_pad // gb,),
        in_specs=[
            # streamed per grid step (double-buffered by the Pallas pipeline)
            pl.BlockSpec((gb, t, c), lambda i: (i, 0, 0)),
            # constant index_maps: fetched once, VMEM-resident across steps
            pl.BlockSpec((c, hidden), lambda i: (0, 0)),
            pl.BlockSpec((2, hidden), lambda i: (0, 0)),
        ],
        # U (=32) < 128 lanes means masked stores; output is ~6% of traffic, and
        # a packed (., 128) store would need a lane-merging in-kernel reshape,
        # so it is intentionally left in the natural (GB, U) layout.
        out_specs=pl.BlockSpec((gb, u), lambda i: (i, 0)),
        compiler_params=pltpu.CompilerParams(
            dimension_semantics=("parallel",)),   # shard group blocks across TCs
    )(x, wf, c2)
    return out[:g]


def group_aggregate(member_embeds, act_embeds, params):
    """Original-module interface: member (T, U), act (T, A) -> (1, U)."""
    return group_aggregate_batched(member_embeds[None], act_embeds[None], params)


def init_params(key, user_ebd_size, act_ebd_size):
    """Deterministic init mimicking torch.nn.Linear default (uniform +-1/sqrt(fan_in))."""
    ks = jax.random.split(key, 6)

    def unif(k, shape, fan_in):
        bound = 1.0 / jnp.sqrt(jnp.float32(fan_in))
        return jax.random.uniform(k, shape, jnp.float32, -bound, bound)

    return {
        "Wu": unif(ks[0], (user_ebd_size, 16), user_ebd_size),
        "bu": unif(ks[1], (1, 16), user_ebd_size),
        "Wa": unif(ks[2], (act_ebd_size, 16), act_ebd_size),
        "ba": unif(ks[3], (1, 16), act_ebd_size),
        "W2": unif(ks[4], (16, 1), 16),
        "b2": unif(ks[5], (1, 1), 16),
    }


def reference_forward(member_embeds, act_embeds, params):
    """Pure-JAX reference reproducing the PyTorch forward for one group."""
    m = member_embeds @ params["Wu"] + params["bu"]
    a = act_embeds @ params["Wa"] + params["ba"]
    att = jnp.maximum(m + a, 0.0) @ params["W2"] + params["b2"]       # (T, 1)
    w = jax.nn.softmax(att.reshape(1, -1), axis=1)                    # (1, T)
    return w @ member_embeds                                          # (1, U)


if __name__ == "__main__":
    T = 8              # members per group
    USER_EBD = 32      # user embedding size
    ACT_EBD = 32       # activity embedding size

    key = jax.random.PRNGKey(0)
    k_mem, k_act, k_par, k_mem2, k_act2 = jax.random.split(key, 5)
    params = init_params(k_par, USER_EBD, ACT_EBD)

    # ---- small batch: single grid step -------------------------------------
    G = 16
    member_embeds = jax.random.normal(k_mem, (G, T, USER_EBD), jnp.float32)
    act_embeds = jax.random.normal(k_act, (G, T, ACT_EBD), jnp.float32)
    ref = jax.vmap(lambda m, a: reference_forward(m, a, params)[0])(
        member_embeds, act_embeds)                                    # (G, U)

    agg_f32 = jax.jit(functools.partial(group_aggregate_batched, group_block=512))
    out_f32 = jax.block_until_ready(agg_f32(member_embeds, act_embeds, params))
    assert out_f32.shape == (G, USER_EBD)
    # Tolerance covers the EUP approximate reciprocal used for the softmax denom.
    assert jnp.allclose(out_f32, ref, atol=3e-3, rtol=3e-3)

    # bf16 streaming path (valid on v5e/v6e/v7x; f32 accumulation + epilogue).
    agg_bf16 = jax.jit(functools.partial(
        group_aggregate_batched, group_block=512, input_dtype=jnp.bfloat16))
    out_bf16 = jax.block_until_ready(agg_bf16(member_embeds, act_embeds, params))
    assert out_bf16.shape == (G, USER_EBD)
    assert jnp.allclose(out_bf16, ref, atol=1e-1)

    # ---- larger batch: multi-step grid + group padding ----------------------
    G2 = 300
    member2 = jax.random.normal(k_mem2, (G2, T, USER_EBD), jnp.float32)
    act2 = jax.random.normal(k_act2, (G2, T, ACT_EBD), jnp.float32)
    ref2 = jax.vmap(lambda m, a: reference_forward(m, a, params)[0])(member2, act2)

    agg_multi = jax.jit(functools.partial(group_aggregate_batched, group_block=128))
    out2 = jax.block_until_ready(agg_multi(member2, act2, params))
    assert out2.shape == (G2, USER_EBD)
    assert jnp.allclose(out2, ref2, atol=3e-3, rtol=3e-3)

    # ---- original single-group interface ------------------------------------
    single = jax.block_until_ready(
        group_aggregate(member_embeds[0], act_embeds[0], params))
    assert single.shape == (1, USER_EBD)
    assert jnp.allclose(single, ref[:1], atol=3e-3, rtol=3e-3)

    print("KERNEL_OK")
</pallas_src>

<mosaic_0001>
module attributes {stable_mosaic.version = 11 : i64} {
  func.func @_group_aggregate_kernel(%arg0: i32, %arg1: memref<16x8x64xf32, #tpu.memory_space<vmem>>, %arg2: memref<64x16xf32, #tpu.memory_space<vmem>>, %arg3: memref<2x16xf32, #tpu.memory_space<vmem>>, %arg4: memref<16x32xf32, #tpu.memory_space<vmem>>) attributes {dimension_semantics = [#tpu.dimension_semantics<parallel>], iteration_bounds = array<i64: 1>, scalar_prefetch = 0 : i64, scratch_operands = 0 : i64, tpu.core_type = #tpu.core_type<tc>, window_params = [{transform_indices = @transform_0, window_bounds = array<i64: 16, 8, 64>}, {pipeline_mode = #tpu.pipeline_mode<synchronous>, transform_indices = @transform_1, window_bounds = array<i64: 64, 16>}, {pipeline_mode = #tpu.pipeline_mode<synchronous>, transform_indices = @transform_2, window_bounds = array<i64: 2, 16>}, {transform_indices = @transform_3, window_bounds = array<i64: 16, 32>}]} {
    %c0 = arith.constant 0 : index
    %c0_0 = arith.constant 0 : index
    %c0_1 = arith.constant 0 : index
    %0 = vector.load %arg1[%c0, %c0_0, %c0_1] : memref<16x8x64xf32, #tpu.memory_space<vmem>>, vector<16x8x64xf32>
    %1 = vector.shape_cast %0 : vector<16x8x64xf32> to vector<128x64xf32>
    %c0_2 = arith.constant 0 : index
    %c0_3 = arith.constant 0 : index
    %2 = vector.load %arg3[%c0_2, %c0_3] : memref<2x16xf32, #tpu.memory_space<vmem>>, vector<1x16xf32>
    %c1 = arith.constant 1 : index
    %c0_4 = arith.constant 0 : index
    %3 = vector.load %arg3[%c1, %c0_4] : memref<2x16xf32, #tpu.memory_space<vmem>>, vector<1x16xf32>
    %c0_5 = arith.constant 0 : index
    %c0_6 = arith.constant 0 : index
    %4 = vector.load %arg2[%c0_5, %c0_6] : memref<64x16xf32, #tpu.memory_space<vmem>>, vector<64x16xf32>
    %cst = arith.constant dense<0.000000e+00> : vector<128x16xf32>
    %5 = tpu.matmul %1, %4, %cst {dimension_numbers = #tpu.dot_dimension_numbers<[1], [0], [0], [1], [0, 0, 1, 1], [], []>} : vector<128x64xf32>, vector<64x16xf32>, vector<128x16xf32> -> vector<128x16xf32>
    %6 = vector.broadcast %2 : vector<1x16xf32> to vector<128x16xf32>
    %7 = arith.addf %5, %6 : vector<128x16xf32>
    %cst_7 = arith.constant 0.000000e+00 : f32
    %8 = vector.broadcast %cst_7 : f32 to vector<128x16xf32>
    %9 = arith.maximumf %7, %8 : vector<128x16xf32>
    %10 = vector.broadcast %3 : vector<1x16xf32> to vector<128x16xf32>
    %11 = arith.mulf %9, %10 : vector<128x16xf32>
    %cst_8 = arith.constant dense<0.000000e+00> : vector<128xf32>
    %12 = vector.multi_reduction <add>, %11, %cst_8 [1] : vector<128x16xf32> to vector<128xf32>
    %13 = vector.shape_cast %12 : vector<128xf32> to vector<128x1xf32>
    %14 = vector.shape_cast %13 : vector<128x1xf32> to vector<16x8x1xf32>
    %cst_9 = arith.constant dense<0xFF800000> : vector<16x1xf32>
    %15 = vector.multi_reduction <maximumf>, %14, %cst_9 [1] : vector<16x8x1xf32> to vector<16x1xf32>
    %16 = vector.shape_cast %15 : vector<16x1xf32> to vector<16x1x1xf32>
    %17 = vector.broadcast %16 : vector<16x1x1xf32> to vector<16x8x1xf32>
    %18 = arith.subf %14, %17 : vector<16x8x1xf32>
    %19 = math.exp %18 : vector<16x8x1xf32>
    %cst_10 = arith.constant dense<0.000000e+00> : vector<16x1xf32>
    %20 = vector.multi_reduction <add>, %19, %cst_10 [1] : vector<16x8x1xf32> to vector<16x1xf32>
    %21 = vector.extract_strided_slice %0 {offsets = [0, 0, 0], sizes = [16, 8, 32], strides = [1, 1, 1]} : vector<16x8x64xf32> to vector<16x8x32xf32>
    %22 = vector.broadcast %19 : vector<16x8x1xf32> to vector<16x8x32xf32>
    %23 = arith.mulf %22, %21 : vector<16x8x32xf32>
    %cst_11 = arith.constant dense<0.000000e+00> : vector<16x32xf32>
    %24 = vector.multi_reduction <add>, %23, %cst_11 [1] : vector<16x8x32xf32> to vector<16x32xf32>
    %25 = tpu.reciprocal %20 {approx = true} : vector<16x1xf32> -> vector<16x1xf32>
    %26 = vector.broadcast %25 : vector<16x1xf32> to vector<16x32xf32>
    %27 = arith.mulf %24, %26 : vector<16x32xf32>
    %c0_12 = arith.constant 0 : index
    %c0_13 = arith.constant 0 : index
    %28 = vector.load %arg4[%c0_12, %c0_13] : memref<16x32xf32, #tpu.memory_space<vmem>>, vector<16x32xf32>
    tpu.vector_store %arg4[%c0_12, %c0_13], %27 {strides = array<i32>} : memref<16x32xf32, #tpu.memory_space<vmem>>, vector<16x32xf32>,
    return
  }
  func.func @transform_0(%arg0: i32) -> (i32, i32, i32) {
    %c0_i32 = arith.constant 0 : i32
    %c0_i32_0 = arith.constant 0 : i32
    %c0_i32_1 = arith.constant 0 : i32
    return %arg0, %c0_i32, %c0_i32_0 : i32, i32, i32
  }
  func.func @transform_1(%arg0: i32) -> (i32, i32) {
    %c0_i32 = arith.constant 0 : i32
    %c0_i32_0 = arith.constant 0 : i32
    %c0_i32_1 = arith.constant 0 : i32
    return %c0_i32, %c0_i32_0 : i32, i32
  }
  func.func @transform_2(%arg0: i32) -> (i32, i32) {
    %c0_i32 = arith.constant 0 : i32
    %c0_i32_0 = arith.constant 0 : i32
    %c0_i32_1 = arith.constant 0 : i32
    return %c0_i32, %c0_i32_0 : i32, i32
  }
  func.func @transform_3(%arg0: i32) -> (i32, i32) {
    %c0_i32 = arith.constant 0 : i32
    %c0_i32_0 = arith.constant 0 : i32
    return %arg0, %c0_i32 : i32, i32
  }
}

</mosaic_0001>

<bundles_post_ra>
// kernel: group_aggregate_batched.1
= control target key start
LH: loop header
LB: loop body
LE: loop exit
PB: predicated region body
PF: predicated region fallthrough
CT: control target
= control target key end

     0   :  { %vm45_vm0 = vcmask 523264   ;;  %s1390_s0 = inlined_call_operand.vmem [shape: f32[16,8,64], index: 0, kind: input, shape index: {}]   ;;  %s1391_s1 = inlined_call_operand.vmem [shape: f32[64,16], index: 1, kind: input, shape index: {}]   ;;  %s1392_s2 = inlined_call_operand.vmem [shape: f32[2,16], index: 2, kind: input, shape index: {}]   ;;  %s1393_s3 = inlined_call_operand.hbm [shape: f32[16,32], index: 3, kind: output, shape index: {}]  }
   0x1   :  { %v33_v0 = vld [vmem:[%s1391_s1] sm:$0xff]  ;;  %v34_v1 = vld [vmem:[%s1391_s1 + $0x8] sm:$0xff]  ;;  %v35_v2 = vld [vmem:[%s1391_s1 + $0x10] sm:$0xff] }
   0x2   :  { %v864_v3 = vpack.c.bf16 %v34_v1, %v33_v0  ;;  %v36_v4 = vld [vmem:[%s1391_s1 + $0x18] sm:$0xff]  ;;  %v37_v6 = vld [vmem:[%s1391_s1 + $0x20] sm:$0xff]  ;;  %v38_v7 = vld [vmem:[%s1391_s1 + $0x28] sm:$0xff] }
   0x3   :  { %v868_v5 = vpack.c.bf16 %v36_v4, %v35_v2  ;;  %v1023_v8 = vld [vmem:[%s1390_s0] sm:$0xff]  ;;  %v872_v10 = vpack.c.bf16 %v38_v7, %v37_v6  ;;  %v39_v11 = vld [vmem:[%s1391_s1 + $0x30] sm:$0xff]  ;;  %v40_v12 = vld [vmem:[%s1391_s1 + $0x38] sm:$0xff] }
   0x4   :  { %865 = vmatprep.subr.bf16.mxu0 %v864_v3  ;;  %880 = vmatprep.subr.bf16.mxu1 %v864_v3  ;;  %v1028_v9 = vld [vmem:[%s1390_s0 + $0x40] sm:$0xff] }
   0x5   :  { %867 = vmatpush3.bf16.msra.mxu0 %v864_v3  ;;  %884 = vmatpush3.bf16.msra.mxu1 %v864_v3 }
   0x6   :  { %869 = vmatprep.subr.bf16.mxu0 %v868_v5  ;;  %881 = vmatprep.subr.bf16.mxu1 %v868_v5 }
   0x7   :  { %840 = vmatprep.mubr.msk.f32.mxu0 %vm45_vm0, %v1023_v8  ;;  %852 = vmatprep.mubr.msk.f32.mxu1 %vm45_vm0, %v1028_v9 }
   0x9   :  { %871 = vmatpush3.bf16.msra.mxu0 %v868_v5  ;;  %885 = vmatpush3.bf16.msra.mxu1 %v868_v5 }
   0xa   :  { %8 = vsyncpa [#allocation3], 0  ;;  %873 = vmatprep.subr.bf16.mxu0 %v872_v10  ;;  %882 = vmatprep.subr.bf16.mxu1 %v872_v10  ;;  %v876_v13 = vpack.c.bf16 %v40_v12, %v39_v11  ;;  %v1043_v14 = vld [vmem:[%s1390_s0 + $0x8] sm:$0xff]  ;;  %v1053_v16 = vld [vmem:[%s1390_s0 + $0x10] sm:$0xff]  ;;  %vm275_vm1 = vcmask 130048   ;;  %vm580_vm2 = vcmask 261120  }
   0xb   :  { %v1048_v15 = vld [vmem:[%s1390_s0 + $0x48] sm:$0xff]  ;;  %v1058_v17 = vld [vmem:[%s1390_s0 + $0x50] sm:$0xff]  ;;  %v1071_v18 = vld [vmem:[%s1390_s0 + $0x18] sm:$0xff]  ;;  %vm741_vm3 = vcmask 1041409   ;;  %vm743_vm4 = vcmask 1042434   ;;  %vm745_vm5 = vcmask 1043459  }
   0xc   :  { %v1076_v19 = vld [vmem:[%s1390_s0 + $0x58] sm:$0xff]  ;;  %v1081_v20 = vld [vmem:[%s1390_s0 + $0x20] sm:$0xff]  ;;  %v1099_v22 = vld [vmem:[%s1390_s0 + $0x28] sm:$0xff]  ;;  %vm747_vm6 = vcmask 1044484   ;;  %vm749_vm7 = vcmask 1045509   ;;  %vm751_vm8 = vcmask 1046534  }
   0xd   :  { %875 = vmatpush3.bf16.msra.mxu0 %v872_v10  ;;  %886 = vmatpush3.bf16.msra.mxu1 %v872_v10  ;;  %v1086_v21 = vld [vmem:[%s1390_s0 + $0x60] sm:$0xff]  ;;  %v1104_v23 = vld [vmem:[%s1390_s0 + $0x68] sm:$0xff]  ;;  %v1109_v24 = vld [vmem:[%s1390_s0 + $0x30] sm:$0xff]  ;;  %vm753_vm9 = vcmask 1047559  }
   0xe   :  { %877 = vmatprep.subr.bf16.mxu0 %v876_v13  ;;  %883 = vmatprep.subr.bf16.mxu1 %v876_v13  ;;  %v1114_v25 = vld [vmem:[%s1390_s0 + $0x70] sm:$0xff]  ;;  %v1127_v26 = vld [vmem:[%s1390_s0 + $0x38] sm:$0xff]  ;;  %v1141_v28 = vld [vmem:[%s1392_s2] ss:$0 sm:$0xff] }
   0xf   :  { %v1132_v27 = vld [vmem:[%s1390_s0 + $0x78] sm:$0xff]  ;;  %v1150_v37 = vld [vmem:[%s1392_s2 + $0x1] ss:$0 sm:$0xff]  ;;  %s979_s2 = smov [#allocation2]  }
  0x10   :  { %s771_s7 = sshll.u32 %s979_s2, 4  ;;  %s772_s7 = int_to_ptr.vmem [resolvable:$true] %s771_s7 }
  0x11   :  { %879 = vmatpush3.bf16.msra.mxu0 %v876_v13  ;;  %887 = vmatpush3.bf16.msra.mxu1 %v876_v13  ;;  %s955_s8 = scalar_lea.vmem %s772_s7, 256  ;;  %p960_p1 = scmp.lt.s32.totalorder %s772_s7, %s772_s7 }
  0x12   :  { %p956_p0 = scmp.ne.s32.totalorder %s772_s7, %s955_s8  ;;  %p961_p2 = scmp.lt.s32.totalorder %s955_s8, %s955_s8 }
  0x14   :  { %841 = vmatmul.mubr.msk.f32.vlgmr.msra.gmra.mrb[0].mxu0 %vm45_vm0, %v1043_v14  ;;  %853 = vmatmul.mubr.msk.f32.vlgmr.msra.gmra.mrb[0].mxu1 %vm45_vm0, %v1048_v15  ;;  %p962_p3 = por %p961_p2, %p960_p1 }
  0x15   :  { %843 = vmatprep.mubr.msk.f32.mxu0 %vm45_vm0, %v1053_v16  ;;  %855 = vmatprep.mubr.msk.f32.mxu1 %vm45_vm0, %v1058_v17 }
  0x16   :  { %p963_p4 = pnand %p962_p3, %p956_p0 }
  0x18   :  { %844 = vmatmul.mubr.msk.f32.gmra.mrb[2].mxu0 %vm45_vm0, %v1071_v18  ;;  %856 = vmatmul.mubr.msk.f32.gmra.mrb[2].mxu1 %vm45_vm0, %v1076_v19 }
  0x19   :  { %846 = vmatprep.mubr.msk.f32.mxu0 %vm45_vm0, %v1081_v20  ;;  %858 = vmatprep.mubr.msk.f32.mxu1 %vm45_vm0, %v1086_v21 }
  0x1c   :  { %847 = vmatmul.mubr.msk.f32.gmra.mrb[4].mxu0 %vm45_vm0, %v1099_v22  ;;  %859 = vmatmul.mubr.msk.f32.gmra.mrb[4].mxu1 %vm45_vm0, %v1104_v23 }
  0x1d   :  { %849 = vmatprep.mubr.msk.f32.mxu0 %vm45_vm0, %v1109_v24  ;;  %861 = vmatprep.mubr.msk.f32.mxu1 %vm45_vm0, %v1114_v25 }
  0x20   :  { %850 = vmatmul.mubr.msk.f32.gmra.mrb[6].mxu0 %vm45_vm0, %v1127_v26  ;;  %862 = vmatmul.mubr.msk.f32.gmra.mrb[6].mxu1 %vm45_vm0, %v1132_v27 }
  0xe7   :  { %v842_v29 = vpop.f32.mrb[0].mxu0  ;;  %v854_v30 = vpop.f32.mrb[0].mxu1 }
  0xe8   :  { %v166_v31 = vadd.f32 %v842_v29, %v1141_v28  ;;  %v206_v32 = vadd.f32 %v854_v30, %v1141_v28  ;;  %v160_v33 = vpop.f32.mrb[1].mxu0  ;;  %v200_v34 = vpop.f32.mrb[1].mxu1 }
  0xe9   :  { %v161_v35 = vadd.f32 %v1141_v28, %v160_v33  ;;  %v201_v36 = vadd.f32 %v1141_v28, %v200_v34 }
  0xea   :  { %v240_v38 = vmax.f32 %v166_v31, 0.0  ;;  %v248_v39 = vmax.f32 %v206_v32, 0.0 }
  0xeb   :  { %v239_v40 = vmax.f32 %v161_v35, 0.0  ;;  %v247_v41 = vmax.f32 %v201_v36, 0.0  ;;  %v845_v42 = vpop.f32.mrb[2].mxu0  ;;  %v857_v43 = vpop.f32.mrb[2].mxu1 }
  0xec   :  { %v176_v44 = vadd.f32 %v845_v42, %v1141_v28  ;;  %v216_v45 = vadd.f32 %v857_v43, %v1141_v28  ;;  %v268_v46 = vmul.f32 %v1150_v37, %v248_v39  ;;  %v210_v47 = vpop.f32.mrb[3].mxu1  ;;  %v260_v48 = vmul.f32 %v1150_v37, %v240_v38  ;;  %v170_v49 = vpop.f32.mrb[3].mxu0 }
  0xed   :  { %v211_v50 = vadd.f32 %v1141_v28, %v210_v47  ;;  %v171_v51 = vadd.f32 %v1141_v28, %v170_v49  ;;  %v267_v52 = vmul.f32 %v1150_v37, %v247_v41  ;;  %v259_v53 = vmul.f32 %v1150_v37, %v239_v40 }
  0xee   :  { %v242_v54 = vmax.f32 %v176_v44, 0.0  ;;  %v250_v55 = vmax.f32 %v216_v45, 0.0  ;;  %v303_v56 = vsel %vm275_vm1, %v268_v46, 0.0  ;;  %v279_v57 = vsel %vm275_vm1, %v260_v48, 0.0 }
  0xef   :  { %304 = vadd.xlane.f32.xlu1 %v303_v56  ;;  %280 = vadd.xlane.f32.xlu0 %v279_v57  ;;  %v848_v58 = vpop.f32.mrb[4].mxu0  ;;  %v860_v59 = vpop.f32.mrb[4].mxu1  ;;  %v249_v2 = vmax.f32 %v211_v50, 0.0  ;;  %v241_v3 = vmax.f32 %v171_v51, 0.0  ;;  %v300_v4 = vsel %vm275_vm1, %v267_v52, 0.0  ;;  %v276_v5 = vsel %vm275_vm1, %v259_v53, 0.0 }
  0xf0   :  { %v186_v60 = vadd.f32 %v848_v58, %v1141_v28  ;;  %v226_v61 = vadd.f32 %v860_v59, %v1141_v28  ;;  %v220_v62 = vpop.f32.mrb[5].mxu1  ;;  %v270_v63 = vmul.f32 %v1150_v37, %v250_v55  ;;  %v180_v0 = vpop.f32.mrb[5].mxu0  ;;  %v262_v1 = vmul.f32 %v1150_v37, %v242_v54 }
  0xf1   :  { %v221_v31 = vadd.f32 %v1141_v28, %v220_v62  ;;  %v181_v32 = vadd.f32 %v1141_v28, %v180_v0  ;;  %v269_v33 = vmul.f32 %v1150_v37, %v249_v2  ;;  %v261_v34 = vmul.f32 %v1150_v37, %v241_v3 }
  0xf2   :  { %v244_v10 = vmax.f32 %v186_v60, 0.0  ;;  %v252_v11 = vmax.f32 %v226_v61, 0.0  ;;  %v309_v12 = vsel %vm275_vm1, %v270_v63, 0.0  ;;  %v285_v13 = vsel %vm275_vm1, %v262_v1, 0.0 }
  0xf3   :  { %301 = vadd.xlane.f32.xlu1 %v300_v4  ;;  %277 = vadd.xlane.f32.xlu0 %v276_v5  ;;  %v851_v6 = vpop.f32.mrb[6].mxu0  ;;  %v863_v7 = vpop.f32.mrb[6].mxu1  ;;  %v251_v40 = vmax.f32 %v221_v31, 0.0  ;;  %v243_v41 = vmax.f32 %v181_v32, 0.0  ;;  %v306_v42 = vsel %vm275_vm1, %v269_v33, 0.0  ;;  %v282_v43 = vsel %vm275_vm1, %v261_v34, 0.0 }
  0xf4   :  { %v190_v29 = vpop.f32.mrb[7].mxu0  ;;  %v230_v30 = vpop.f32.mrb[7].mxu1  ;;  %v272_v38 = vmul.f32 %v1150_v37, %v252_v11  ;;  %v264_v39 = vmul.f32 %v1150_v37, %v244_v10  ;;  %v196_v48 = vadd.f32 %v851_v6, %v1141_v28  ;;  %v236_v49 = vadd.f32 %v863_v7, %v1141_v28 }
  0xf5   :  { %v191_v35 = vadd.f32 %v1141_v28, %v190_v29  ;;  %v231_v36 = vadd.f32 %v1141_v28, %v230_v30  ;;  %v271_v50 = vmul.f32 %v1150_v37, %v251_v40  ;;  %v263_v51 = vmul.f32 %v1150_v37, %v243_v41 }
  0xf6   :  { %v315_v46 = vsel %vm275_vm1, %v272_v38, 0.0  ;;  %v291_v47 = vsel %vm275_vm1, %v264_v39, 0.0  ;;  %v246_v54 = vmax.f32 %v196_v48, 0.0  ;;  %v254_v55 = vmax.f32 %v236_v49, 0.0 }
  0xf7   :  { %310 = vadd.xlane.f32.xlu1 %v309_v12  ;;  %286 = vadd.xlane.f32.xlu0 %v285_v13  ;;  %v245_v44 = vmax.f32 %v191_v35, 0.0  ;;  %v253_v45 = vmax.f32 %v231_v36, 0.0  ;;  %v312_v56 = vsel %vm275_vm1, %v271_v50, 0.0  ;;  %v288_v57 = vsel %vm275_vm1, %v263_v51, 0.0 }
  0xf8   :  { %v274_v59 = vmul.f32 %v1150_v37, %v254_v55  ;;  %v266_v60 = vmul.f32 %v1150_v37, %v246_v54 }
  0xf9   :  { %v273_v52 = vmul.f32 %v1150_v37, %v253_v45  ;;  %v265_v53 = vmul.f32 %v1150_v37, %v245_v44 }
  0xfa   :  { %v321_v61 = vsel %vm275_vm1, %v274_v59, 0.0  ;;  %v297_v62 = vsel %vm275_vm1, %v266_v60, 0.0 }
  0xfb   :  { %307 = vadd.xlane.f32.xlu1 %v306_v42  ;;  %283 = vadd.xlane.f32.xlu0 %v282_v43  ;;  %v318_v28 = vsel %vm275_vm1, %v273_v52, 0.0  ;;  %v294_v58 = vsel %vm275_vm1, %v265_v53, 0.0 }
  0xff   :  { %316 = vadd.xlane.f32.xlu1 %v315_v46  ;;  %292 = vadd.xlane.f32.xlu0 %v291_v47 }
 0x103   :  { %313 = vadd.xlane.f32.xlu1 %v312_v56  ;;  %289 = vadd.xlane.f32.xlu0 %v288_v57 }
 0x107   :  { %319 = vadd.xlane.f32.xlu1 %v318_v28  ;;  %295 = vadd.xlane.f32.xlu0 %v294_v58 }
 0x10b   :  { %322 = vadd.xlane.f32.xlu1 %v321_v61  ;;  %298 = vadd.xlane.f32.xlu0 %v297_v62 }
 0x17c   :  { %v305_v63 = vpop.xlane.xlu1 %304  ;;  %v281_v0 = vpop.xlane.xlu0 %280 }
 0x17d   :  { %v378_v1 = vrot.slane %v305_v63, 4  ;;  %v330_v2 = vrot.slane %v281_v0, 4 }
 0x17f   :  { %v379_v3 = vmax.f32 %v305_v63, %v378_v1  ;;  %v331_v4 = vmax.f32 %v281_v0, %v330_v2 }
 0x180   :  { %v302_v5 = vpop.xlane.xlu1 %301  ;;  %v278_v6 = vpop.xlane.xlu0 %277 }
 0x181   :  { %v380_v7 = vrot.slane %v379_v3, 2  ;;  %v332_v10 = vrot.slane %v331_v4, 2  ;;  %v372_v11 = vrot.slane %v302_v5, 4  ;;  %v324_v37 = vrot.slane %v278_v6, 4 }
 0x183   :  { %v381_v12 = vmax.f32 %v379_v3, %v380_v7  ;;  %v333_v13 = vmax.f32 %v331_v4, %v332_v10  ;;  %v373_v29 = vmax.f32 %v302_v5, %v372_v11  ;;  %v325_v30 = vmax.f32 %v278_v6, %v324_v37 }
 0x184   :  { %v311_v31 = vpop.xlane.xlu1 %310  ;;  %v287_v32 = vpop.xlane.xlu0 %286 }
 0x185   :  { %v382_v33 = vrot.slane %v381_v12, 1  ;;  %v334_v34 = vrot.slane %v333_v13, 1  ;;  %v374_v35 = vrot.slane %v373_v29, 2  ;;  %v326_v36 = vrot.slane %v325_v30, 2 }
 0x186   :  { %v390_v38 = vrot.slane %v311_v31, 4  ;;  %v342_v39 = vrot.slane %v287_v32, 4 }
 0x187   :  { %v383_v40 = vmax.f32 %v381_v12, %v382_v33  ;;  %v335_v41 = vmax.f32 %v333_v13, %v334_v34  ;;  %v375_v42 = vmax.f32 %v373_v29, %v374_v35  ;;  %v327_v43 = vmax.f32 %v325_v30, %v326_v36 }
 0x188   :  { %v391_v44 = vmax.f32 %v311_v31, %v390_v38  ;;  %v343_v45 = vmax.f32 %v287_v32, %v342_v39  ;;  %v308_v46 = vpop.xlane.xlu1 %307  ;;  %v284_v47 = vpop.xlane.xlu0 %283 }
 0x189   :  { %v429_v48 = vsub.f32 %v305_v63, %v383_v40  ;;  %v421_v49 = vsub.f32 %v281_v0, %v335_v41  ;;  %v376_v50 = vrot.slane %v375_v42, 1  ;;  %v328_v51 = vrot.slane %v327_v43, 1 }
 0x18a   :  { %v392_v52 = vrot.slane %v391_v44, 2  ;;  %v344_v53 = vrot.slane %v343_v45, 2  ;;  %v384_v54 = vrot.slane %v308_v46, 4  ;;  %v336_v55 = vrot.slane %v284_v47, 4 }
 0x18b   :  { %v454_v56 = vmul.f32 1.442695, %v429_v48  ;;  %v438_v57 = vmul.f32 1.442695, %v421_v49  ;;  %v377_v28 = vmax.f32 %v375_v42, %v376_v50  ;;  %v329_v58 = vmax.f32 %v327_v43, %v328_v51 }
 0x18c   :  { %v393_v59 = vmax.f32 %v391_v44, %v392_v52  ;;  %v345_v60 = vmax.f32 %v343_v45, %v344_v53  ;;  %v385_v61 = vmax.f32 %v308_v46, %v384_v54  ;;  %v337_v62 = vmax.f32 %v284_v47, %v336_v55  ;;  %v1196_v1 = vpop.xlane.xlu1 %316  ;;  %v1199_v10 = vpop.xlane.xlu0 %292 }
 0x18d   :  { %891 = vpow2.f32 %v454_v56  ;;  %v428_v2 = vsub.f32 %v302_v5, %v377_v28  ;;  %v420_v63 = vsub.f32 %v278_v6, %v329_v58  ;;  %v402_v0 = vrot.slane %v1196_v1, 4 }
 0x18e   :  { %893 = vpow2.f32 %v438_v57  ;;  %v394_v3 = vrot.slane %v393_v59, 1  ;;  %v346_v4 = vrot.slane %v345_v60, 1  ;;  %v386_v7 = vrot.slane %v385_v61, 2 }
 0x18f   :  { %v452_v11 = vmul.f32 1.442695, %v428_v2  ;;  %v436_v37 = vmul.f32 1.442695, %v420_v63  ;;  %v338_v12 = vrot.slane %v337_v62, 2  ;;  %v403_v13 = vmax.f32 %v1196_v1, %v402_v0 }
 0x190   :  { %v395_v29 = vmax.f32 %v393_v59, %v394_v3  ;;  %v347_v30 = vmax.f32 %v345_v60, %v346_v4  ;;  %v387_v33 = vmax.f32 %v385_v61, %v386_v7  ;;  %v354_v6 = vrot.slane %v1199_v10, 4  ;;  %v1203_v44 = vpop.xlane.xlu1 %313  ;;  %v1210_v0 = vpop.xlane.xlu0 %289 }
 0x191   :  { %895 = vpow2.f32 %v452_v11  ;;  %v339_v34 = vmax.f32 %v337_v62, %v338_v12  ;;  %v404_v5 = vrot.slane %v403_v13, 2  ;;  %v396_v52 = vrot.slane %v1203_v44, 4 }
 0x192   :  { %897 = vpow2.f32 %v436_v37  ;;  %v431_v35 = vsub.f32 %v311_v31, %v395_v29  ;;  %v423_v36 = vsub.f32 %v287_v32, %v347_v30  ;;  %v388_v38 = vrot.slane %v387_v33, 1 }
 0x193   :  { %v340_v39 = vrot.slane %v339_v34, 1  ;;  %v405_v43 = vmax.f32 %v403_v13, %v404_v5  ;;  %v355_v49 = vmax.f32 %v1199_v10, %v354_v6  ;;  %v397_v60 = vmax.f32 %v1203_v44, %v396_v52 }
 0x194   :  { %v458_v40 = vmul.f32 1.442695, %v431_v35  ;;  %v442_v41 = vmul.f32 1.442695, %v423_v36  ;;  %v389_v42 = vmax.f32 %v387_v33, %v388_v38  ;;  %v348_v33 = vrot.slane %v1210_v0, 4 }
 0x195   :  { %v341_v45 = vmax.f32 %v339_v34, %v340_v39  ;;  %v406_v54 = vrot.slane %v405_v43, 1  ;;  %v356_v28 = vrot.slane %v355_v49, 2 }
 0x196   :  { %899 = vpow2.f32 %v458_v40  ;;  %v430_v48 = vsub.f32 %v308_v46, %v389_v42 }
 0x197   :  { %v892_v50 = vpop.eup %891  ;;  %901 = vpow2.f32 %v442_v41  ;;  %v422_v51 = vsub.f32 %v284_v47, %v341_v45  ;;  %v407_v63 = vmax.f32 %v405_v43, %v406_v54  ;;  %v357_v12 = vmax.f32 %v355_v49, %v356_v28  ;;  %v1223_v45 = vpop.xlane.xlu1 %319 }
 0x198   :  { %v894_v31 = vpop.eup %893  ;;  %v522_v32 = vrot.slane %v892_v50, 4  ;;  %v456_v53 = vmul.f32 1.442695, %v430_v48  ;;  %v573_v46 = vmul.f32 %v892_v50, %v1048_v15 }
 0x199   :  { %v474_v55 = vrot.slane %v894_v31, 4  ;;  %v440_v56 = vmul.f32 1.442695, %v422_v51  ;;  %v565_v62 = vmul.f32 %v894_v31, %v1043_v14  ;;  %v433_v6 = vsub.f32 %v1196_v1, %v407_v63 }
 0x19a   :  { %v523_v57 = vadd.f32 %v892_v50, %v522_v32  ;;  %903 = vpow2.f32 %v456_v53  ;;  %v644_v13 = vsel %vm580_vm2, %v573_v46, 0.0  ;;  %v358_v43 = vrot.slane %v357_v12, 1 }
 0x19b   :  { %v896_v58 = vpop.eup %895  ;;  %v475_v59 = vadd.f32 %v894_v31, %v474_v55  ;;  %905 = vpow2.f32 %v440_v56  ;;  %v588_v34 = vsel %vm580_vm2, %v565_v62, 0.0  ;;  %v645_v40 = vrot.slane %v644_v13, 4 }
 0x19c   :  { %v898_v47 = vpop.eup %897  ;;  %v524_v61 = vrot.slane %v523_v57, 2  ;;  %v516_v2 = vrot.slane %v896_v58, 4  ;;  %v572_v4 = vmul.f32 %v896_v58, %v1028_v9  ;;  %v398_v9 = vrot.slane %v397_v60, 2 }
 0x19d   :  { %v476_v3 = vrot.slane %v475_v59, 2  ;;  %v468_v7 = vrot.slane %v898_v47, 4  ;;  %v564_v15 = vmul.f32 %v898_v47, %v1023_v8  ;;  %v589_v52 = vrot.slane %v588_v34, 4 }
 0x19e   :  { %v525_v11 = vadd.f32 %v524_v61, %v523_v57  ;;  %v517_v37 = vadd.f32 %v896_v58, %v516_v2  ;;  %v637_v38 = vsel %vm580_vm2, %v572_v4, 0.0  ;;  %v349_v32 = vmax.f32 %v1210_v0, %v348_v33 }
 0x19f   :  { %v477_v29 = vadd.f32 %v476_v3, %v475_v59  ;;  %v469_v30 = vadd.f32 %v898_v47, %v468_v7  ;;  %v581_v42 = vsel %vm580_vm2, %v564_v15, 0.0  ;;  %v638_v31 = vrot.slane %v637_v38, 4 }
 0x1a0   :  { %v1216_v14 = vpop.eup %899  ;;  %v518_v5 = vrot.slane %v517_v37, 2  ;;  %v526_v36 = vrot.slane %v525_v11, 1  ;;  %v582_v56 = vrot.slane %v581_v42, 4  ;;  %v408_v57 = vrot.slane %v1223_v45, 4 }
 0x1a1   :  { %v902_v35 = vpop.eup %901  ;;  %v470_v8 = vrot.slane %v469_v30, 2  ;;  %v534_v39 = vrot.slane %v1216_v14, 4  ;;  %v478_v48 = vrot.slane %v477_v29, 1  ;;  %v462_v46 = vmul.f32 1.442695, %v433_v6 }
 0x1a2   :  { %v519_v41 = vadd.f32 %v518_v5, %v517_v37  ;;  %v486_v1 = vrot.slane %v902_v35, 4  ;;  %v527_v54 = vadd.f32 %v526_v36, %v525_v11  ;;  %v399_v59 = vmax.f32 %v397_v60, %v398_v9 }
 0x1a3   :  { %v471_v49 = vadd.f32 %v470_v8, %v469_v30  ;;  %v535_v50 = vadd.f32 %v1216_v14, %v534_v39  ;;  %v1228_v47 = vadd.f32 %v645_v40, %v644_v13  ;;  %v479_v61 = vadd.f32 %v478_v48, %v477_v29  ;;  %v1237_v30 = vpop.xlane.xlu0 %295 }
 0x1a4   :  { %v904_v51 = vpop.eup %903  ;;  %v520_v55 = vrot.slane %v519_v41, 1  ;;  %v487_v62 = vadd.f32 %v902_v35, %v486_v1  ;;  %v359_v2 = vmax.f32 %v357_v12, %v358_v43  ;;  %v1230_v63 = vadd.f32 %v589_v52, %v588_v34 }
 0x1a5   :  { %v906_v53 = vpop.eup %905  ;;  %v472_v28 = vrot.slane %v471_v49, 1  ;;  %v536_v58 = vrot.slane %v535_v50, 2  ;;  %v1232_v3 = vadd.f32 %v638_v31, %v637_v38  ;;  %v528_v4 = vrot.slane %v904_v51, 4  ;;  %v1244_v38 = vpop.xlane.xlu1 %322 }
 0x1a6   :  { %v480_v7 = vrot.slane %v906_v53, 4  ;;  %907 = vrcp.f32 %v527_v54  ;;  %v521_v11 = vadd.f32 %v520_v55, %v519_v41  ;;  %v1234_v37 = vadd.f32 %v582_v56, %v581_v42 }
 0x1a7   :  { %v574_v15 = vmul.f32 %v904_v51, %v1058_v17  ;;  %v473_v60 = vadd.f32 %v472_v28, %v471_v49  ;;  %v537_v13 = vadd.f32 %v536_v58, %v535_v50  ;;  %v1240_v29 = vmul.f32 %v902_v35, %v1071_v18  ;;  %v1252_v43 = vpop.xlane.xlu0 %298 }
 0x1a8   :  { %909 = vpow2.f32 %v462_v46  ;;  %v488_v12 = vrot.slane %v487_v62, 2  ;;  %v566_v33 = vmul.f32 %v906_v53, %v1053_v16  ;;  %v425_v34 = vsub.f32 %v1199_v10, %v359_v2 }
 0x1a9   :  { %911 = vrcp.f32 %v479_v61  ;;  %v529_v5 = vadd.f32 %v904_v51, %v528_v4  ;;  %v481_v6 = vadd.f32 %v906_v53, %v480_v7  ;;  %v400_v9 = vrot.slane %v399_v59, 1 }
 0x1aa   :  { %v350_v36 = vrot.slane %v349_v32, 2  ;;  %913 = vrcp.f32 %v521_v11  ;;  %v1247_v17 = vsel %vm580_vm2, %v574_v15, 0.0  ;;  %v446_v8 = vmul.f32 1.442695, %v425_v34 }
 0x1ab   :  { %v409_v18 = vmax.f32 %v1223_v45, %v408_v57  ;;  %915 = vrcp.f32 %v473_v60  ;;  %v538_v35 = vrot.slane %v537_v13, 1  ;;  %v401_v39 = vmax.f32 %v399_v59, %v400_v9 }
 0x1ac   :  { %v351_v40 = vmax.f32 %v349_v32, %v350_v36  ;;  %v489_v16 = vadd.f32 %v488_v12, %v487_v62  ;;  %v360_v10 = vrot.slane %v1237_v30, 4  ;;  %v414_v42 = vrot.slane %v1244_v38, 4 }
 0x1ad   :  { %v410_v41 = vrot.slane %v409_v18, 2  ;;  %v530_v48 = vrot.slane %v529_v5, 2  ;;  %v482_v49 = vrot.slane %v481_v6, 2  ;;  %917 = vpow2.f32 %v446_v8 }
 0x1ae   :  { %v432_v50 = vsub.f32 %v1203_v44, %v401_v39  ;;  %v352_v1 = vrot.slane %v351_v40, 1  ;;  %v361_v52 = vmax.f32 %v1237_v30, %v360_v10  ;;  %v415_v31 = vmax.f32 %v1244_v38, %v414_v42 }
 0x1af   :  { %v411_v51 = vmax.f32 %v409_v18, %v410_v41  ;;  %v539_v32 = vadd.f32 %v538_v35, %v537_v13  ;;  %v595_v53 = vsel %vm580_vm2, %v566_v33, 0.0  ;;  %v366_v55 = vrot.slane %v1252_v43, 4 }
 0x1b0   :  { %v460_v54 = vmul.f32 1.442695, %v432_v50  ;;  %v1259_v56 = vpop.eup %907  ;;  %v490_v57 = vrot.slane %v489_v16, 1  ;;  %v353_v28 = vmax.f32 %v351_v40, %v352_v1  ;;  %v362_v46 = vrot.slane %v361_v52, 2 }
 0x1b1   :  { %v412_v58 = vrot.slane %v411_v51, 1  ;;  %v531_v44 = vadd.f32 %v530_v48, %v529_v5  ;;  %v416_v61 = vrot.slane %v415_v31, 2  ;;  %v367_v62 = vmax.f32 %v1252_v43, %v366_v55 }
 0x1b2   :  { %v1261_v59 = vpop.eup %909  ;;  %919 = vpow2.f32 %v460_v54  ;;  %v424_v7 = vsub.f32 %v1210_v0, %v353_v28  ;;  %v363_v15 = vmax.f32 %v361_v52, %v362_v46  ;;  %v483_v60 = vadd.f32 %v482_v49, %v481_v6 }
 0x1b3   :  { %v1264_v2 = vpop.eup %911  ;;  %v546_v4 = vrot.slane %v1261_v59, 4  ;;  %v413_v11 = vmax.f32 %v411_v51, %v412_v58  ;;  %v596_v13 = vrot.slane %v595_v53, 4  ;;  %v417_v12 = vmax.f32 %v415_v31, %v416_v61 }
 0x1b4   :  { %v368_v33 = vrot.slane %v367_v62, 2  ;;  %v1268_v34 = vpop.eup %913  ;;  %921 = vrcp.f32 %v539_v32  ;;  %v444_v5 = vmul.f32 1.442695, %v424_v7  ;;  %v364_v36 = vrot.slane %v363_v15, 1 }
 0x1b5   :  { %v434_v9 = vsub.f32 %v1223_v45, %v413_v11  ;;  %v1271_v8 = vpop.eup %915  ;;  %v491_v18 = vadd.f32 %v490_v57, %v489_v16  ;;  %v547_v35 = vadd.f32 %v1261_v59, %v546_v4  ;;  %v418_v39 = vrot.slane %v417_v12, 1 }
 0x1b6   :  { %v369_v0 = vmax.f32 %v367_v62, %v368_v33  ;;  %v532_v40 = vrot.slane %v531_v44, 1  ;;  %923 = vpow2.f32 %v444_v5  ;;  %v365_v41 = vmax.f32 %v363_v15, %v364_v36 }
 0x1b7   :  { %v464_v6 = vmul.f32 1.442695, %v434_v9  ;;  %v918_v10 = vpop.eup %917  ;;  %v484_v42 = vrot.slane %v483_v60, 1  ;;  %v419_v48 = vmax.f32 %v417_v12, %v418_v39  ;;  %v597_v50 = vadd.f32 %v596_v13, %v595_v53 }
 0x1b8   :  { %v370_v49 = vrot.slane %v369_v0, 1  ;;  %v498_v1 = vrot.slane %v918_v10, 4  ;;  %v426_v45 = vsub.f32 %v1237_v30, %v365_v41  ;;  %v584_v51 = vrot.slane %v1234_v37, 2 }
 0x1b9   :  { %925 = vpow2.f32 %v464_v6  ;;  %v548_v16 = vrot.slane %v547_v35, 2  ;;  %v435_v52 = vsub.f32 %v1244_v38, %v419_v48  ;;  %v591_v32 = vrot.slane %v1230_v63, 2 }
 0x1ba   :  { %v371_v31 = vmax.f32 %v369_v0, %v370_v49  ;;  %v499_v54 = vadd.f32 %v918_v10, %v498_v1  ;;  %v448_v55 = vmul.f32 1.442695, %v426_v45  ;;  %v569_v57 = vmul.f32 %v918_v10, %v1099_v22 }
 0x1bb   :  { %v598_v28 = vrot.slane %v597_v50, 2  ;;  %v533_v46 = vadd.f32 %v532_v40, %v531_v44  ;;  %v466_v53 = vmul.f32 1.442695, %v435_v52  ;;  %v602_v30 = vsel %vm580_vm2, %v1240_v29, 0.0 }
 0x1bc   :  { %v920_v58 = vpop.eup %919  ;;  %v427_v61 = vsub.f32 %v1252_v43, %v371_v31  ;;  %v485_v62 = vadd.f32 %v484_v42, %v483_v60  ;;  %927 = vpow2.f32 %v448_v55  ;;  %v585_v38 = vadd.f32 %v584_v51, %v1234_v37 }
 0x1bd   :  { %v540_v4 = vrot.slane %v920_v58, 4  ;;  %v549_v7 = vadd.f32 %v548_v16, %v547_v35  ;;  %929 = vpow2.f32 %v466_v53  ;;  %v592_v15 = vadd.f32 %v591_v32, %v1230_v63 }
 0x1be   :  { %v450_v11 = vmul.f32 1.442695, %v427_v61  ;;  %v1284_v22 = vpop.eup %921  ;;  %v500_v13 = vrot.slane %v499_v54, 2  ;;  %v599_v44 = vadd.f32 %v598_v28, %v597_v50  ;;  %v603_v12 = vrot.slane %v602_v30, 4 }
 0x1bf   :  { %v616_v43 = vsel %vm580_vm2, %v569_v57, 0.0  ;;  %v1289_v29 = vmul.f32 %v1216_v14, %v1076_v19  ;;  %v652_v60 = vrot.slane %v1247_v17, 4  ;;  %v541_v33 = vadd.f32 %v920_v58, %v540_v4 }
 0x1c0   :  { %931 = vpow2.f32 %v450_v11  ;;  %v924_v37 = vpop.eup %923  ;;  %v586_v5 = vrot.slane %v585_v38, 1  ;;  %v604_v9 = vadd.f32 %v603_v12, %v602_v30  ;;  %v617_v63 = vrot.slane %v616_v43, 4 }
 0x1c1   :  { %933 = vrcp.f32 %v491_v18  ;;  %v492_v36 = vrot.slane %v924_v37, 4  ;;  %v568_v35 = vmul.f32 %v924_v37, %v1081_v20  ;;  %v593_v39 = vrot.slane %v592_v15, 1 }
 0x1c2   :  { %935 = vrcp.f32 %v533_v46  ;;  %v501_v40 = vadd.f32 %v500_v13, %v499_v54  ;;  %v550_v6 = vrot.slane %v549_v7, 1  ;;  %v600_v19 = vrot.slane %v599_v44, 1 }
 0x1c3   :  { %v926_v0 = vpop.eup %925  ;;  %937 = vrcp.f32 %v485_v62  ;;  %v542_v14 = vrot.slane %v541_v33, 2  ;;  %v493_v41 = vadd.f32 %v924_v37, %v492_v36  ;;  %v609_v42 = vsel %vm580_vm2, %v568_v35, 0.0 }
 0x1c4   :  { %v552_v10 = vrot.slane %v926_v0, 4  ;;  %v1296_v18 = vmul.f32 %v1261_v59, %v1104_v23  ;;  %v1298_v48 = vadd.f32 %v586_v5, %v585_v38  ;;  %v605_v49 = vrot.slane %v604_v9, 2 }
 0x1c5   :  { %v618_v50 = vadd.f32 %v617_v63, %v616_v43  ;;  %v494_v20 = vrot.slane %v493_v41, 2  ;;  %v1300_v45 = vadd.f32 %v593_v39, %v592_v15  ;;  %v610_v51 = vrot.slane %v609_v42, 4 }
 0x1c6   :  { %v553_v1 = vadd.f32 %v926_v0, %v552_v10  ;;  %v928_v16 = vpop.eup %927  ;;  %v576_v52 = vmul.f32 %v920_v58, %v1086_v21  ;;  %v502_v31 = vrot.slane %v501_v40, 1  ;;  %v1303_v32 = vadd.f32 %v550_v6, %v549_v7 }
 0x1c7   :  { %v640_v54 = vrot.slane %v1232_v3, 2  ;;  %v930_v55 = vpop.eup %929  ;;  %v543_v23 = vadd.f32 %v542_v14, %v541_v33  ;;  %v504_v59 = vrot.slane %v928_v16, 4  ;;  %v1306_v57 = vadd.f32 %v600_v19, %v599_v44 }
 0x1c8   :  { %v647_v28 = vrot.slane %v1228_v47, 2  ;;  %v558_v46 = vrot.slane %v930_v55, 4  ;;  %v570_v53 = vmul.f32 %v928_v16, %v1109_v24  ;;  %v606_v61 = vadd.f32 %v605_v49, %v604_v9 }
 0x1c9   :  { %v619_v30 = vrot.slane %v618_v50, 2  ;;  %v495_v4 = vadd.f32 %v494_v20, %v493_v41  ;;  %v554_v21 = vrot.slane %v553_v1, 2  ;;  %v505_v58 = vadd.f32 %v928_v16, %v504_v59 }
 0x1ca   :  { %v932_v62 = vpop.eup %931  ;;  %v611_v38 = vadd.f32 %v610_v51, %v609_v42  ;;  %v559_v11 = vadd.f32 %v930_v55, %v558_v46  ;;  %v1312_v13 = vadd.f32 %v502_v31, %v501_v40  ;;  %v544_v43 = vrot.slane %v543_v23, 1 }
 0x1cb   :  { %v1310_v7 = vpop.eup %933  ;;  %v510_v15 = vrot.slane %v932_v62, 4  ;;  %v571_v44 = vmul.f32 %v932_v62, %v1127_v26  ;;  %v506_v33 = vrot.slane %v505_v58, 2  ;;  %v578_v24 = vmul.f32 %v926_v0, %v1114_v25 }
 0x1cc   :  { %v1315_v12 = vpop.eup %935  ;;  %v641_v37 = vadd.f32 %v640_v54, %v1232_v3  ;;  %v607_v63 = vrot.slane %v606_v61, 1  ;;  %v620_v36 = vadd.f32 %v619_v30, %v618_v50  ;;  %v623_v35 = vsel %vm580_vm2, %v570_v53, 0.0 }
 0x1cd   :  { %v1319_v5 = vpop.eup %937  ;;  %v511_v9 = vadd.f32 %v932_v62, %v510_v15  ;;  %v496_v39 = vrot.slane %v495_v4, 1  ;;  %v555_v40 = vadd.f32 %v554_v21, %v553_v1  ;;  %v612_v6 = vrot.slane %v611_v38, 2 }
 0x1ce   :  { %v630_v26 = vsel %vm580_vm2, %v571_v44, 0.0  ;;  %v507_v19 = vadd.f32 %v506_v33, %v505_v58  ;;  %v560_v41 = vrot.slane %v559_v11, 2  ;;  %v624_v10 = vrot.slane %v623_v35, 4 }
 0x1cf   :  { %v512_v14 = vrot.slane %v511_v9, 2  ;;  %v545_v42 = vadd.f32 %v544_v43, %v543_v23  ;;  %v631_v25 = vrot.slane %v630_v26, 4  ;;  %v642_v0 = vrot.slane %v641_v37, 1 }
 0x1d0   :  { %v1324_v3 = vadd.f32 %v647_v28, %v1228_v47  ;;  %v579_v50 = vmul.f32 %v930_v55, %v1132_v27  ;;  %v621_v20 = vrot.slane %v620_v36, 1  ;;  %v653_v1 = vadd.f32 %v652_v60, %v1247_v17 }
 0x1d1   :  { %v513_v49 = vadd.f32 %v512_v14, %v511_v9  ;;  %v497_v51 = vadd.f32 %v496_v39, %v495_v4  ;;  %v1330_v16 = vadd.f32 %v607_v63, %v606_v61  ;;  %v1332_v31 = vadd.f32 %v612_v6, %v611_v38 }
 0x1d2   :  { %v658_v54 = vsel %vm580_vm2, %v1289_v29, 0.0  ;;  %v508_v23 = vrot.slane %v507_v19, 1  ;;  %v556_v59 = vrot.slane %v555_v40, 1  ;;  %v561_v47 = vadd.f32 %v560_v41, %v559_v11 }
 0x1d3   :  { %v625_v28 = vadd.f32 %v624_v10, %v623_v35  ;;  %v632_v46 = vadd.f32 %v631_v25, %v630_v26  ;;  %v659_v53 = vrot.slane %v658_v54, 4  ;;  %v665_v27 = vsel %vm580_vm2, %v576_v52, 0.0 }
 0x1d4   :  { %v672_v55 = vsel %vm580_vm2, %v1296_v18, 0.0  ;;  %v514_v17 = vrot.slane %v513_v49, 1  ;;  %v1339_v60 = vadd.f32 %v621_v20, %v620_v36  ;;  %v654_v61 = vrot.slane %v653_v1, 2 }
 0x1d5   :  { %v666_v30 = vrot.slane %v665_v27, 4  ;;  %v614_v62 = vrot.slane %v1332_v31, 1  ;;  %v660_v4 = vadd.f32 %v659_v53, %v658_v54  ;;  %v673_v29 = vrot.slane %v672_v55, 4 }
 0x1d6   :  { %v679_v21 = vsel %vm580_vm2, %v578_v24, 0.0  ;;  %v562_v58 = vrot.slane %v561_v47, 1  ;;  %v626_v38 = vrot.slane %v625_v28, 2  ;;  %v509_v52 = vadd.f32 %v508_v23, %v507_v19 }
 0x1d7   :  { %v667_v11 = vadd.f32 %v666_v30, %v665_v27  ;;  %v680_v15 = vrot.slane %v679_v21, 4  ;;  %v633_v44 = vrot.slane %v632_v46, 2  ;;  %v674_v43 = vadd.f32 %v673_v29, %v672_v55 }
 0x1d8   :  { %v686_v18 = vsel %vm580_vm2, %v579_v50, 0.0  ;;  %v515_v33 = vadd.f32 %v514_v17, %v513_v49  ;;  %v655_v9 = vadd.f32 %v654_v61, %v653_v1  ;;  %v661_v63 = vrot.slane %v660_v4, 2 }
 0x1d9   :  { %v681_v36 = vadd.f32 %v680_v15, %v679_v21  ;;  %v557_v35 = vadd.f32 %v556_v59, %v555_v40  ;;  %v643_v39 = vadd.f32 %v642_v0, %v641_v37  ;;  %v687_v6 = vrot.slane %v686_v18, 4 }
 0x1da   :  { %939 = vrcp.f32 %v497_v51  ;;  %v563_v24 = vadd.f32 %v562_v58, %v561_v47  ;;  %v627_v26 = vadd.f32 %v626_v38, %v625_v28  ;;  %v668_v14 = vrot.slane %v667_v11, 2 }
 0x1db   :  { %941 = vrcp.f32 %v1312_v13  ;;  %v634_v19 = vadd.f32 %v633_v44, %v632_v46  ;;  %v675_v41 = vrot.slane %v674_v43, 2  ;;  %v688_v10 = vadd.f32 %v687_v6, %v686_v18 }
 0x1dc   :  { %943 = vrcp.f32 %v509_v52  ;;  %v656_v25 = vrot.slane %v655_v9, 1  ;;  %v662_v49 = vadd.f32 %v661_v63, %v660_v4  ;;  %v682_v50 = vrot.slane %v681_v36, 2 }
 0x1dd   :  { %945 = vrcp.f32 %v515_v33  ;;  %v649_v37 = vrot.slane %v1324_v3, 1  ;;  %v689_v40 = vrot.slane %v688_v10, 2  ;;  %v709_v0 = vmul.f32 %v1271_v8, %v1298_v48 }
 0x1de   :  { %947 = vrcp.f32 %v545_v42  ;;  %v628_v13 = vrot.slane %v627_v26, 1  ;;  %v669_v20 = vadd.f32 %v668_v14, %v667_v11  ;;  %v711_v1 = vmul.f32 %v1319_v5, %v1306_v57 }
 0x1df   :  { %949 = vrcp.f32 %v1303_v32  ;;  %v635_v51 = vrot.slane %v634_v19, 1  ;;  %v676_v54 = vadd.f32 %v675_v41, %v674_v43  ;;  %v710_v23 = vmul.f32 %v1264_v2, %v1300_v45 }
 0x1e0   :  { %951 = vrcp.f32 %v557_v35  ;;  %v657_v59 = vadd.f32 %v656_v25, %v655_v9  ;;  %v663_v42 = vrot.slane %v662_v49, 1  ;;  %v683_v47 = vadd.f32 %v682_v50, %v681_v36 }
 0x1e1   :  { %953 = vrcp.f32 %v563_v24  ;;  %v650_v8 = vadd.f32 %v649_v37, %v1324_v3  ;;  %v690_v48 = vadd.f32 %v689_v40, %v688_v10  ;;  %v717_v28 = vmul.f32 %v1268_v34, %v643_v39 }
 0x1e2   :  { %v742_v32 = vsel %vm741_vm3, %v710_v23, %v709_v0  ;;  %v615_v57 = vadd.f32 %v614_v62, %v1332_v31  ;;  %v670_v5 = vrot.slane %v669_v20, 1  ;;  %v719_v46 = vmul.f32 %v1315_v12, %v657_v59 }
 0x1e3   :  { %v744_v53 = vsel %vm743_vm4, %v711_v1, %v742_v32  ;;  %v629_v2 = vadd.f32 %v628_v13, %v627_v26  ;;  %v677_v45 = vrot.slane %v676_v54, 1  ;;  %v712_v55 = vmul.f32 %v1310_v7, %v1330_v16 }
 0x1e4   :  { %v940_v27 = vpop.eup %939  ;;  %v718_v3 = vmul.f32 %v1259_v56, %v650_v8  ;;  %v636_v61 = vadd.f32 %v635_v51, %v634_v19  ;;  %v664_v34 = vadd.f32 %v663_v42, %v662_v49  ;;  %v684_v30 = vrot.slane %v683_v47, 1 }
 0x1e5   :  { %v942_v17 = vpop.eup %941  ;;  %v713_v4 = vmul.f32 %v940_v27, %v615_v57  ;;  %v691_v31 = vrot.slane %v690_v48, 1  ;;  %v746_v12 = vsel %vm745_vm5, %v712_v55, %v744_v53  ;;  %v671_v38 = vadd.f32 %v670_v5, %v669_v20 }
 0x1e6   :  { %v944_v29 = vpop.eup %943  ;;  %v714_v62 = vmul.f32 %v942_v17, %v1339_v60  ;;  %v755_v21 = vsel %vm741_vm3, %v718_v3, %v717_v28  ;;  %v678_v15 = vadd.f32 %v677_v45, %v676_v54  ;;  %v720_v44 = vmul.f32 %v1284_v22, %v664_v34 }
 0x1e7   :  { %v946_v58 = vpop.eup %945  ;;  %v715_v11 = vmul.f32 %v944_v29, %v629_v2  ;;  %v748_v7 = vsel %vm747_vm6, %v713_v4, %v746_v12  ;;  %v756_v56 = vsel %vm743_vm4, %v719_v46, %v755_v21  ;;  %v685_v60 = vadd.f32 %v684_v30, %v683_v47 }
 0x1e8   :  { %v948_v16 = vpop.eup %947  ;;  %v716_v52 = vmul.f32 %v946_v58, %v636_v61  ;;  %v750_v43 = vsel %vm749_vm7, %v714_v62, %v748_v7  ;;  %v692_v36 = vadd.f32 %v691_v31, %v690_v48  ;;  %v757_v6 = vsel %vm745_vm5, %v720_v44, %v756_v56 }
 0x1e9   :  { %v950_v18 = vpop.eup %949  ;;  %v721_v33 = vmul.f32 %v948_v16, %v671_v38  ;;  %v752_v9 = vsel %vm751_vm8, %v715_v11, %v750_v43 }
 0x1ea   :  { %v952_v63 = vpop.eup %951  ;;  %v722_v35 = vmul.f32 %v950_v18, %v678_v15  ;;  %v754_v39 = vsel %vm753_vm9, %v716_v52, %v752_v9 }
 0x1eb   :  { %v954_v24 = vpop.eup %953  ;;  %v723_v26 = vmul.f32 %v952_v63, %v685_v60  ;;  %v758_v22 = vsel %vm747_vm6, %v721_v33, %v757_v6  ;;  %764 = vst.msk [vmem:[#allocation2] sm:$0xff] %vm580_vm2, %v754_v39 }
 0x1ec   :  { %v724_v14 = vmul.f32 %v954_v24, %v692_v36  ;;  %v759_v19 = vsel %vm749_vm7, %v722_v35, %v758_v22 }
 0x1ed   :  { %v760_v41 = vsel %vm751_vm8, %v723_v26, %v759_v19 }
 0x1ee   :  { %v761_v10 = vsel %vm753_vm9, %v724_v14, %v760_v41 }
 0x1ef   :  { %765 = vst.msk [vmem:[#allocation2 + $0x8] sm:$0xff] %vm580_vm2, %v761_v10 }
 0x1f0   :  { %966 = shalt.err (!%p963_p4)
}
 0x1f1   :  { %s967_s11 = scalar_lea.hbm %s1393_s3, 256 }
 0x1f2   :  { %p968_p5 = scmp.ne.s32.totalorder %s1393_s3, %s967_s11  ;;  %p971_p6 = scmp.lt.u32.totalorder %s967_s11, %s1393_s3 }
 0x1f4   :  { %p973_p7 = pnand %p971_p6, %p968_p5 }
 0x1f6   :  { %976 = shalt.err (!%p973_p7)
}
 0x1f7   :  { %s980_s16 = smov 128   ;;  %s981_s17 = smov 8  }
 0x1f8   :  { %777 = dma.vmem_to_hbm [thread:$0]  %s772_s7, 256, %s1393_s3, [#allocation3], %s980_s16, %s980_s16, %s981_s17  }
 0x1f9   :  { %977 = dma.done.wait [#allocation3], 256  }
 0x1fa   :  { %978 = vsyncadd [#allocation3], 4294967040 }
 0x1fb   :  { %781 = vsyncpa [#allocation3], 1 }

</bundles_post_ra>
